<compile_context>
chip_gen: v7x
topology: tpu7x:2x2x1
jax: 0.10.0
libtpu: 0.0.40
codegen_flags: <defaults>
</compile_context>

<pallas_src>
import jax
import jax.numpy as jnp
from jax.experimental import pallas as pl
from jax.experimental.pallas import tpu as pltpu

_NEG_BIG = -1e30  # padding value for padded class columns (exp() underflows to 0)


def _ce_kernel(logits_ref, tgt_ref, loss_ref, m_sc, l_sc, pick_sc):
    """One (row_tile, class_tile) step of the online-softmax cross entropy."""
    j = pl.program_id(1)
    nj = pl.num_programs(1)

    @pl.when(j == 0)
    def _():
        m_sc[...] = jnp.full_like(m_sc, -jnp.inf)
        l_sc[...] = jnp.zeros_like(l_sc)
        pick_sc[...] = jnp.zeros_like(pick_sc)

    x = logits_ref[...]            # (tm, tc) f32
    tgt = tgt_ref[...]             # (tm, 1)  int32
    tc = x.shape[1]

    # Column (class) ids of this tile; mask of the target column per row.
    col_ids = j * tc + jax.lax.broadcasted_iota(jnp.int32, x.shape, 1)
    is_tgt = col_ids == tgt        # (tm, tc) bool

    # Online softmax update (numerically stable across class tiles).
    m_prev = m_sc[...]
    m_new = jnp.maximum(m_prev, jnp.max(x, axis=1, keepdims=True))
    alpha = jnp.exp(m_prev - m_new)
    l_sc[...] = alpha * l_sc[...] + jnp.sum(jnp.exp(x - m_new), axis=1, keepdims=True)
    m_sc[...] = m_new

    # The target class lives in exactly one class tile; accumulate its logit.
    pick_sc[...] = pick_sc[...] + jnp.sum(
        jnp.where(is_tgt, x, 0.0), axis=1, keepdims=True)

    @pl.when(j == nj - 1)
    def _():
        # per-row loss = logsumexp(logits) - logits[target]
        loss_ref[...] = (m_sc[...] + jnp.log(l_sc[...])) - pick_sc[...]


def _round_up(x, m):
    return (x + m - 1) // m * m


def cross_entropy_loss(logits, target, *, block_n=256, block_c=2048,
                       vmem_limit_bytes=32 * 1024 * 1024):
    """logits: (N, C) float, target: (N,) int -> scalar f32 mean cross-entropy."""
    n, c = logits.shape
    logits = logits.astype(jnp.float32)
    target = target.astype(jnp.int32)

    # Tile sizes: respect the (8, 128) tiling constraint, clamp to (padded) extents.
    tm = min(_round_up(block_n, 8), _round_up(n, 8))
    tc = min(_round_up(block_c, 128), _round_up(c, 128))
    n_pad = _round_up(n, tm)
    c_pad = _round_up(c, tc)

    x = logits
    if n_pad != n:                               # padded rows: discarded in the mean
        x = jnp.pad(x, ((0, n_pad - n), (0, 0)))
    if c_pad != c:                               # padded classes: -1e30 -> exp == 0
        x = jnp.pad(x, ((0, 0), (0, c_pad - c)), constant_values=_NEG_BIG)

    tgt = target
    if n_pad != n:
        tgt = jnp.pad(tgt, (0, n_pad - n))
    tgt2d = tgt.reshape(n_pad, 1)

    grid = (n_pad // tm, c_pad // tc)

    per_row = pl.pallas_call(
        _ce_kernel,
        out_shape=jax.ShapeDtypeStruct((n_pad, 1), jnp.float32),
        grid_spec=pltpu.PrefetchScalarGridSpec(
            num_scalar_prefetch=0,
            grid=grid,
            in_specs=[
                pl.BlockSpec((tm, tc), lambda i, j: (i, j)),   # logits tile
                pl.BlockSpec((tm, 1), lambda i, j: (i, 0)),    # target column
            ],
            out_specs=pl.BlockSpec((tm, 1), lambda i, j: (i, 0)),
            scratch_shapes=[
                pltpu.VMEM((tm, 1), jnp.float32),   # running max
                pltpu.VMEM((tm, 1), jnp.float32),   # running sum-exp
                pltpu.VMEM((tm, 1), jnp.float32),   # picked target logit
            ],
        ),
        compiler_params=pltpu.CompilerParams(
            dimension_semantics=("parallel", "arbitrary"),
            vmem_limit_bytes=vmem_limit_bytes,
        ),
    )(x, tgt2d)

    # Final mean reduction over the valid rows is done in the wrapper so the
    # batch grid axis stays parallel (no shared scalar accumulator in-kernel).
    return jnp.mean(per_row[:n, 0])


def _reference(logits, target):
    """Pure-JAX reference: nll_loss(log_softmax(logits), target), mean reduction."""
    logprob = jax.nn.log_softmax(logits.astype(jnp.float32), axis=-1)
    picked = logprob[jnp.arange(target.shape[0]), target]
    return -jnp.mean(picked)


if __name__ == "__main__":
    # Small shapes consistent with CrossEntropyLoss: batch N=16, classes C=384.
    N, C = 16, 384
    key = jax.random.PRNGKey(0)
    k_x, k_t, k_tp = jax.random.split(key, 3)
    logits = jax.random.normal(k_x, (N, C), dtype=jnp.float32) * 4.0
    target = jax.random.randint(k_t, (N,), 0, C, dtype=jnp.int32)

    # Non-divisible case: 10 rows, 300 classes.  Targets MUST be in [0, 300)
    # (valid class indices for that problem), so draw them for that range.
    Np, Cp = 10, 300
    logits_pad = logits[:Np, :Cp]
    target_pad = jax.random.randint(k_tp, (Np,), 0, Cp, dtype=jnp.int32)

    # Tiled path: grid = (2, 3) exercises the online softmax across class tiles
    # and the per-row-tile partial-loss output.
    loss_tiled = cross_entropy_loss(logits, target, block_n=8, block_c=128)
    # Default (large-tile) path: collapses to a single block at these small shapes.
    loss_full = cross_entropy_loss(logits, target)
    # Non-divisible shapes exercise the row/class padding path.
    loss_pad = cross_entropy_loss(logits_pad, target_pad, block_n=8, block_c=128)
    jax.block_until_ready((loss_tiled, loss_full, loss_pad))

    ref = _reference(logits, target)
    ref_pad = _reference(logits_pad, target_pad)
    assert jnp.allclose(loss_tiled, ref, rtol=1e-5, atol=1e-5), (loss_tiled, ref)
    assert jnp.allclose(loss_full, ref, rtol=1e-5, atol=1e-5), (loss_full, ref)
    assert jnp.allclose(loss_pad, ref_pad, rtol=1e-5, atol=1e-5), (loss_pad, ref_pad)

    print("KERNEL_OK")
</pallas_src>

<mosaic_0001>
module attributes {stable_mosaic.version = 11 : i64} {
  func.func @_ce_kernel(%arg0: i32, %arg1: i32, %arg2: memref<8x128xf32, #tpu.memory_space<vmem>>, %arg3: memref<8x1xi32, #tpu.memory_space<vmem>>, %arg4: memref<8x1xf32, #tpu.memory_space<vmem>>, %arg5: memref<8x1xf32, #tpu.memory_space<vmem>>, %arg6: memref<8x1xf32, #tpu.memory_space<vmem>>, %arg7: memref<8x1xf32, #tpu.memory_space<vmem>>) attributes {dimension_semantics = [#tpu.dimension_semantics<parallel>, #tpu.dimension_semantics<arbitrary>], iteration_bounds = array<i64: 2, 3>, scalar_prefetch = 0 : i64, scratch_operands = 3 : i64, tpu.core_type = #tpu.core_type<tc>, window_params = [{transform_indices = @transform_0, window_bounds = array<i64: 8, 128>}, {transform_indices = @transform_1, window_bounds = array<i64: 8, 1>}, {transform_indices = @transform_2, window_bounds = array<i64: 8, 1>}]} {
    %c0_i32 = arith.constant 0 : i32
    %0 = arith.cmpi eq, %arg1, %c0_i32 : i32
    %1 = arith.extui %0 : i1 to i32
    %c0_i32_0 = arith.constant 0 : i32
    %2 = arith.cmpi ne, %1, %c0_i32_0 : i32
    scf.if %2 {
      %cst_20 = arith.constant 0xFF800000 : f32
      %37 = vector.broadcast %cst_20 : f32 to vector<8x1xf32>
      %c0_21 = arith.constant 0 : index
      %c0_22 = arith.constant 0 : index
      %38 = vector.load %arg5[%c0_21, %c0_22] : memref<8x1xf32, #tpu.memory_space<vmem>>, vector<8x1xf32>
      tpu.vector_store %arg5[%c0_21, %c0_22], %37 {strides = array<i32>} : memref<8x1xf32, #tpu.memory_space<vmem>>, vector<8x1xf32>,
      %cst_23 = arith.constant 0.000000e+00 : f32
      %39 = vector.broadcast %cst_23 : f32 to vector<8x1xf32>
      %c0_24 = arith.constant 0 : index
      %c0_25 = arith.constant 0 : index
      %40 = vector.load %arg6[%c0_24, %c0_25] : memref<8x1xf32, #tpu.memory_space<vmem>>, vector<8x1xf32>
      tpu.vector_store %arg6[%c0_24, %c0_25], %39 {strides = array<i32>} : memref<8x1xf32, #tpu.memory_space<vmem>>, vector<8x1xf32>,
      %cst_26 = arith.constant 0.000000e+00 : f32
      %41 = vector.broadcast %cst_26 : f32 to vector<8x1xf32>
      %c0_27 = arith.constant 0 : index
      %c0_28 = arith.constant 0 : index
      %42 = vector.load %arg7[%c0_27, %c0_28] : memref<8x1xf32, #tpu.memory_space<vmem>>, vector<8x1xf32>
      tpu.vector_store %arg7[%c0_27, %c0_28], %41 {strides = array<i32>} : memref<8x1xf32, #tpu.memory_space<vmem>>, vector<8x1xf32>,
    } else {
    }
    %c0 = arith.constant 0 : index
    %c0_1 = arith.constant 0 : index
    %3 = vector.load %arg2[%c0, %c0_1] : memref<8x128xf32, #tpu.memory_space<vmem>>, vector<8x128xf32>
    %c0_2 = arith.constant 0 : index
    %c0_3 = arith.constant 0 : index
    %4 = vector.load %arg3[%c0_2, %c0_3] : memref<8x1xi32, #tpu.memory_space<vmem>>, vector<8x1xi32>
    %c128_i32 = arith.constant 128 : i32
    %5 = arith.muli %arg1, %c128_i32 : i32
    %6 = tpu.iota {dimensions = array<i32: 1>} : vector<8x128xi32>
    %7 = vector.broadcast %5 : i32 to vector<8x128xi32>
    %8 = arith.addi %7, %6 : vector<8x128xi32>
    %9 = vector.broadcast %4 : vector<8x1xi32> to vector<8x128xi32>
    %10 = arith.cmpi eq, %8, %9 : vector<8x128xi32>
    %c0_4 = arith.constant 0 : index
    %c0_5 = arith.constant 0 : index
    %11 = vector.load %arg5[%c0_4, %c0_5] : memref<8x1xf32, #tpu.memory_space<vmem>>, vector<8x1xf32>
    %cst = arith.constant dense<0xFF800000> : vector<8xf32>
    %12 = vector.multi_reduction <maximumf>, %3, %cst [1] : vector<8x128xf32> to vector<8xf32>
    %13 = vector.shape_cast %12 : vector<8xf32> to vector<8x1xf32>
    %14 = arith.maximumf %11, %13 : vector<8x1xf32>
    %15 = arith.subf %11, %14 : vector<8x1xf32>
    %16 = math.exp %15 : vector<8x1xf32>
    %c0_6 = arith.constant 0 : index
    %c0_7 = arith.constant 0 : index
    %17 = vector.load %arg6[%c0_6, %c0_7] : memref<8x1xf32, #tpu.memory_space<vmem>>, vector<8x1xf32>
    %18 = arith.mulf %16, %17 : vector<8x1xf32>
    %19 = vector.broadcast %14 : vector<8x1xf32> to vector<8x128xf32>
    %20 = arith.subf %3, %19 : vector<8x128xf32>
    %21 = math.exp %20 : vector<8x128xf32>
    %cst_8 = arith.constant dense<0.000000e+00> : vector<8xf32>
    %22 = vector.multi_reduction <add>, %21, %cst_8 [1] : vector<8x128xf32> to vector<8xf32>
    %23 = vector.shape_cast %22 : vector<8xf32> to vector<8x1xf32>
    %24 = arith.addf %18, %23 : vector<8x1xf32>
    %c0_9 = arith.constant 0 : index
    %c0_10 = arith.constant 0 : index
    %25 = vector.load %arg6[%c0_9, %c0_10] : memref<8x1xf32, #tpu.memory_space<vmem>>, vector<8x1xf32>
    tpu.vector_store %arg6[%c0_9, %c0_10], %24 {strides = array<i32>} : memref<8x1xf32, #tpu.memory_space<vmem>>, vector<8x1xf32>,
    %c0_11 = arith.constant 0 : index
    %c0_12 = arith.constant 0 : index
    %26 = vector.load %arg5[%c0_11, %c0_12] : memref<8x1xf32, #tpu.memory_space<vmem>>, vector<8x1xf32>
    tpu.vector_store %arg5[%c0_11, %c0_12], %14 {strides = array<i32>} : memref<8x1xf32, #tpu.memory_space<vmem>>, vector<8x1xf32>,
    %c0_13 = arith.constant 0 : index
    %c0_14 = arith.constant 0 : index
    %27 = vector.load %arg7[%c0_13, %c0_14] : memref<8x1xf32, #tpu.memory_space<vmem>>, vector<8x1xf32>
    %cst_15 = arith.constant 0.000000e+00 : f32
    %28 = vector.broadcast %cst_15 : f32 to vector<8x128xf32>
    %29 = arith.select %10, %3, %28 : vector<8x128xi1>, vector<8x128xf32>
    %cst_16 = arith.constant dense<0.000000e+00> : vector<8xf32>
    %30 = vector.multi_reduction <add>, %29, %cst_16 [1] : vector<8x128xf32> to vector<8xf32>
    %31 = vector.shape_cast %30 : vector<8xf32> to vector<8x1xf32>
    %32 = arith.addf %27, %31 : vector<8x1xf32>
    %c0_17 = arith.constant 0 : index
    %c0_18 = arith.constant 0 : index
    %33 = vector.load %arg7[%c0_17, %c0_18] : memref<8x1xf32, #tpu.memory_space<vmem>>, vector<8x1xf32>
    tpu.vector_store %arg7[%c0_17, %c0_18], %32 {strides = array<i32>} : memref<8x1xf32, #tpu.memory_space<vmem>>, vector<8x1xf32>,
    %c2_i32 = arith.constant 2 : i32
    %34 = arith.cmpi eq, %arg1, %c2_i32 : i32
    %35 = arith.extui %34 : i1 to i32
    %c0_i32_19 = arith.constant 0 : i32
    %36 = arith.cmpi ne, %35, %c0_i32_19 : i32
    scf.if %36 {
      %c0_20 = arith.constant 0 : index
      %c0_21 = arith.constant 0 : index
      %37 = vector.load %arg5[%c0_20, %c0_21] : memref<8x1xf32, #tpu.memory_space<vmem>>, vector<8x1xf32>
      %c0_22 = arith.constant 0 : index
      %c0_23 = arith.constant 0 : index
      %38 = vector.load %arg6[%c0_22, %c0_23] : memref<8x1xf32, #tpu.memory_space<vmem>>, vector<8x1xf32>
      %39 = math.log %38 : vector<8x1xf32>
      %40 = arith.addf %37, %39 : vector<8x1xf32>
      %c0_24 = arith.constant 0 : index
      %c0_25 = arith.constant 0 : index
      %41 = vector.load %arg7[%c0_24, %c0_25] : memref<8x1xf32, #tpu.memory_space<vmem>>, vector<8x1xf32>
      %42 = arith.subf %40, %41 : vector<8x1xf32>
      %c0_26 = arith.constant 0 : index
      %c0_27 = arith.constant 0 : index
      %43 = vector.load %arg4[%c0_26, %c0_27] : memref<8x1xf32, #tpu.memory_space<vmem>>, vector<8x1xf32>
      tpu.vector_store %arg4[%c0_26, %c0_27], %42 {strides = array<i32>} : memref<8x1xf32, #tpu.memory_space<vmem>>, vector<8x1xf32>,
    } else {
    }
    return
  }
  func.func @transform_0(%arg0: i32, %arg1: i32) -> (i32, i32) {
    %c0_i32 = arith.constant 0 : i32
    return %arg0, %arg1 : i32, i32
  }
  func.func @transform_1(%arg0: i32, %arg1: i32) -> (i32, i32) {
    %c0_i32 = arith.constant 0 : i32
    %c0_i32_0 = arith.constant 0 : i32
    return %arg0, %c0_i32 : i32, i32
  }
  func.func @transform_2(%arg0: i32, %arg1: i32) -> (i32, i32) {
    %c0_i32 = arith.constant 0 : i32
    %c0_i32_0 = arith.constant 0 : i32
    return %arg0, %c0_i32 : i32, i32
  }
}

</mosaic_0001>

<bundles_post_ra>
// kernel: tpu_custom_call.1
= control target key start
LH: loop header
LB: loop body
LE: loop exit
PB: predicated region body
PF: predicated region fallthrough
CT: control target
= control target key end

     0   :  { %7 = vsyncpa [#allocation6], 0  ;;  %s720_s0 = inlined_call_operand.hbm [shape: f32[16,384], index: 0, kind: input, shape index: {}]   ;;  %s721_s1 = inlined_call_operand.vmem [shape: s32[16,1], index: 1, kind: input, shape index: {}]   ;;  %s722_s2 = inlined_call_operand.vmem [shape: f32[16,1], index: 2, kind: output, shape index: {}]  }
   0x1   :  { %9 = vsyncpa [#allocation6 + $0x1], 0  ;;  %s557_s9 = smov 0   ;;  %s559_s10 = smov 0  }
   0x2   :  { %s561_s11 = smov 0   ;;  %s563_s12 = smov 0  }
   0x3   :  { %s565_s13 = smov 0   ;;  %s567_s14 = smov 0  }
   0x4   :  { %s569_s15 = smov 0   ;;  %s571_s16 = smov 0  }
   0x5 LB: > { %s342_s17 = sadd.s32 4294967295, %s536_s16   ;;  %s24_s18 = sadd.s32 1, %s528_s14  ;;  %s536_s16 = sphi %s571_s16, %s15_s16   ;;  %s532_s15 = sphi %s569_s15, %s734_s15   ;;  %s528_s14 = sphi %s567_s14, %s733_s14   ;;  %s524_s13 = sphi %s565_s13, %s732_s13   ;;  %s520_s12 = sphi %s563_s12, %s731_s12   ;;  %s516_s11 = sphi %s561_s11, %s730_s11   ;;  %s512_s10 = sphi %s559_s10, %s729_s10   ;;  %s508_s9 = sphi %s557_s9, %s728_s9  }
   0x6   : > { %p25_p0 = scmp.ge.s32.totalorder %s24_s18, 3  ;;  %s27_s19 = sadd.s32 1, %s532_s15 }
   0x7   : > { %s36_s20 = sadd.s32 1, %s516_s11  ;;  %p43_p1 = scmp.ne.s32.totalorder %s516_s11, %s512_s10 }
   0x8   : > { %s736_s18 = smov (%p25_p0, %s24_s18), 0  ;;  %s738_s19 = smov (!%p25_p0, %s27_s19), %s532_s15 }
   0x9   : > { %s32_s21 = ssub.s32 %s528_s14, %s736_s18  ;;  %p44_p2 = scmp.eq.s32.totalorder %s536_s16, 0 }
   0xa   : > { %p29_p3 = scmp.ge.s32.totalorder %s738_s19, 2  ;;  %p49_p4 = scmp.ne.s32.totalorder %s512_s10, %s508_s9 }
   0xb   : > { %p608_p5 = por %p44_p2, %p43_p1  ;;  %p50_p6 = scmp.eq.s32.totalorder %s342_s17, 0 }
   0xc   : > { %s740_s19 = smov (%p29_p3, %s738_s19), 0  ;;  %p364_p8 = scmp.lt.s32.totalorder %s536_s16, 6 }
   0xd   : > { %p614_p7 = por %p50_p6, %p49_p4  ;;  %s31_s24 = ssub.s32 %s532_s15, %s740_s19 }
   0xe   : > { %s33_s25 = sor.u32 %s32_s21, %s31_s24  ;;  %s125_s26 = sand.u32 1, %s516_s11  }
   0xf   : > { %p34_p9 = scmp.eq.s32.totalorder %s33_s25, 0  ;;  %s346_s27 = sshll.u32 %s125_s26, 3 }
  0x10   : > { %s357_s28 = smul.u32 3, %s532_s15  ;;  %s129_s4 = scalar_lea.vmem [#allocation5], %s346_s27 }
  0x11   : > { %s624_s29 = scalar_select %p34_p9, %s516_s11, %s36_s20  }
  0x12   : > { %s134_s30 = sadd.s32 %s528_s14, %s357_s28  ;;  %s138_s5 = sshll.u32 %s129_s4, 4  ;;  %s632_s5 = int_to_ptr.vmem [resolvable:$true] %s138_s5 }
  0x13   : > { %s347_s3 = sshll.u32 %s134_s30, 7  ;;  %p638_p10 = pnand %p364_p8, %p608_p5 }
  0x14   : > { %s630_s8 = scalar_lea.hbm %s720_s0, %s347_s3  ;;  %s126_s17 = scalar_lea.sflag [#allocation6], %s125_s26 }
  0x15   : > { %s440_s20 = scalar_lea.hbm %s630_s8, 128  ;;  %p442_p0 = pneg %p638_p10 }
  0x16   : > { %p441_p13 = scmp.ne.s32.totalorder %s630_s8, %s440_s20  ;;  %s445_s24 = scalar_lea.hbm %s720_s0, 768 }
  0x17   : > { %p446_p3 = scmp.lt.u32.totalorder %s630_s8, %s720_s0  ;;  %p447_p4 = scmp.lt.u32.totalorder %s445_s24, %s440_s20 }
  0x18   : > { %p443_p1 = pnand %p442_p0, %p441_p13  ;;  %p449_p6 = scmp.lt.u32.totalorder %s440_s20, %s630_s8 }
  0x19   : > { %p448_p5 = por %p447_p4, %p446_p3 }
  0x1a   : > { %p444_p2 = pneg %p443_p1 }
  0x1b   : > { %p450_p8 = por %p449_p6, %p448_p5 }
  0x1d   : > { %p451_p9 = pnand %p450_p8, %p444_p2 }
  0x1f   : > { %454 = shalt.err (!%p451_p9)
}
  0x20   : > { %s455_s26 = scalar_lea.vmem %s632_s5, 128  ;;  %s538_s28 = smov [#allocation5]  }
  0x21   : > { %p456_p13 = scmp.ne.s32.totalorder %s632_s5, %s455_s26  ;;  %s460_s30 = sshll.u32 %s538_s28, 4  ;;  %s461_s30 = int_to_ptr.vmem [resolvable:$false] %s460_s30 }
  0x22   : > { %s462_s3 = scalar_lea.vmem %s461_s30, 256  ;;  %p463_p12 = scmp.lt.s32.totalorder %s632_s5, %s461_s30 }
  0x23   : > { %p458_p1 = pnand %p456_p13, %p442_p0  ;;  %p464_p3 = scmp.lt.s32.totalorder %s462_s3, %s455_s26 }
  0x25   : > { %p459_p11 = pneg %p458_p1  ;;  %p465_p4 = por %p464_p3, %p463_p12 }
  0x27   : > { %p466_p5 = pnand %p465_p4, %p459_p11 }
  0x29   : > { %469 = shalt.err (!%p466_p5)
}
  0x2a   : > { %363 = dma.hbm_to_vmem [thread:$0]  (!%p638_p10), %s630_s8, 128, %s632_s5, %s126_s17  }
  0x2b   : > { %p726_p2 = scmp.lt.s32.totalorder %s536_s16, 7  ;;  %p727_p6 = scmp.ge.s32.totalorder %s536_s16, 1 }
  0x2d   : > { %p151_p0 = pnand %p727_p6, %p726_p2 }
  0x2e   : > { %s156_s4 = sand.u32 (!%p151_p0), 1, %s512_s10  }
  0x2f   : > { %154 = sbr.rel (%p151_p0) target bundleno = 522 (0x20a), region = 28  ;;  %s349_s6 = sshll.u32 (!%p151_p0), %s156_s4, 3 }
  0x30   : > { %s157_s7 = scalar_lea.sflag (!%p151_p0), [#allocation6], %s156_s4  ;;  %s160_s20 = scalar_lea.vmem (!%p151_p0), [#allocation5], %s349_s6 }
  0x36   : > { %503 = dma.done.wait (%p614_p7), %s157_s7, 128  }
  0x37   : > { %505 = vsyncadd (%p614_p7), %s157_s7, 4294967168  ;;  %p184_p11 = scmp.lt.s32.totalorder %s524_s13, 1  ;;  %p352_p10 = scmp.ne.s32.totalorder %s520_s12, 0 }
  0x38   : > { %vm196_vm0 = vcmask (!%p352_p10), 7168   ;;  %v539_v0 = vmov (!%p352_p10), -inf   ;;  %v540_v1 = vmov (!%p352_p10), 0.0  }
  0x39   : > { %s742_s13 = smov (!%p184_p11, %s524_s13), 1  ;;  %195 = sbr.rel (%p352_p10) target bundleno = 64 (0x40), region = 36 }
  0x3a   : > { %s350_s5 = sshll.u32 %s742_s13, 3  ;;  %197 = vst.msk [vmem:[#allocation2] sm:$0xff] (!%p352_p10), %vm196_vm0, %v539_v0  ;;  %198 = vst.msk [vmem:[#allocation3] sm:$0xff] (!%p352_p10), %vm196_vm0, %v540_v1 }
  0x3b   : > { %s187_s17 = scalar_lea.vmem %s721_s1, %s350_s5  ;;  %s686_s24 = scalar_lea.vmem %s722_s2, %s350_s5  ;;  %199 = vst.msk [vmem:[#allocation4] sm:$0xff] (!%p352_p10), %vm196_vm0, %v540_v1 }
  0x40 PF: > { %v200_v2 = vld [vmem:[%s160_s20] sm:$0xff]  ;;  %v541_v3 = vmov 0   ;;  %vm231_vm1 = vcmask 7168   ;;  %v203_v11 = vlaneseq  ;;  %s353_s13 = sshll.u32 %s520_s12, 7  ;;  %p354_p7 = scmp.ne.s32.totalorder %s520_s12, 2 }
  0x41   : > { %212 = vmax.xlane.f32.xlu0 %v200_v2  ;;  %433 = vset.pattern.permute.xlu1 %v541_v3  ;;  %v201_v4 = vld [vmem:[%s187_s17] sm:$0xff]  ;;  %v205_v14 = vstv %s353_s13  ;;  %v218_v21 = vld [vmem:[#allocation3] sm:$0xff] }
  0x42   : > { %432 = vset.pattern.permute.xlu0 %v541_v3  ;;  %208 = vperm.xlu1 %433, %v201_v4   ;;  %v211_v5 = vld [vmem:[#allocation2] sm:$0xff]  ;;  %v204_v13 = vand.u32 127, %v203_v11  ;;  %v234_v25 = vld [vmem:[#allocation4] sm:$0xff] }
  0x44   : > { %v206_v15 = vadd.s32 %v205_v14, %v204_v13 }
  0xc1   : > { %v209_v16 = vpop.permute.xlu1 %208 }
  0xc2   : > { %vm210_vm2 = vcmp.eq.s32.totalorder %v206_v15, %v209_v16 }
  0xc3   : > { %v235_v18 = vsel %vm210_vm2, %v200_v2, 0.0 }
  0xce   : > { %v213_v6 = vpop.xlane.xlu0 %212 }
  0xcf   : > { %v214_v7 = vmax.f32 %v211_v5, %v213_v6 }
  0xd1   : > { %v215_v8 = vsub.f32 %v211_v5, %v214_v7  ;;  %233 = vst.msk [vmem:[#allocation2] sm:$0xff] %vm231_vm1, %v214_v7  ;;  %222 = vperm.xlu0 %432, %v214_v7  }
  0xd3   : > { %v216_v19 = vmul.f32 1.442695, %v215_v8 }
  0xd8   : > { %v244_v30 = vld [vmem:[#allocation2] sm:$0xff] (!%p354_p7) }
 0x150   : > { %v223_v9 = vpop.permute.xlu0 %222 }
 0x151   : > { %v225_v10 = vsub.f32 %v200_v2, %v223_v9 }
 0x153   : > { %v226_v12 = vmul.f32 1.442695, %v225_v10 }
 0x155   : > { %434 = vpow2.f32 %v226_v12 }
 0x156   : > { %436 = vpow2.f32 %v216_v19 }
 0x15f   : > { %v435_v17 = vpop.eup %434 }
 0x160   : > { %228 = vadd.xlane.f32.xlu1 %v435_v17  ;;  %v437_v20 = vpop.eup %436 }
 0x161   : > { %v219_v22 = vmul.f32 %v437_v20, %v218_v21 }
 0x164   : > { %236 = vadd.xlane.f32.xlu1 %v235_v18 }
 0x1ed   : > { %v229_v23 = vpop.xlane.xlu1 %228 }
 0x1ee   : > { %v230_v24 = vadd.f32 %v229_v23, %v219_v22  ;;  %243 = sbr.rel (%p354_p7) target bundleno = 522 (0x20a), region = 40 }
 0x1f0   : > { %232 = vst.msk [vmem:[#allocation3] sm:$0xff] %vm231_vm1, %v230_v24 }
 0x1f1   : > { %v237_v26 = vpop.xlane.xlu1 %236 }
 0x1f2   : > { %v238_v27 = vadd.f32 %v237_v26, %v234_v25 }
 0x1f4   : > { %239 = vst.msk [vmem:[#allocation4] sm:$0xff] %vm231_vm1, %v238_v27 }
 0x1f7   : > { %v245_v28 = vld [vmem:[#allocation3] sm:$0xff] }
 0x1f8   : > { %438 = vlog2.f32 %v245_v28 }
 0x1fb   : > { %v249_v32 = vld [vmem:[#allocation4] sm:$0xff] }
 0x202   : > { %v439_v29 = vpop.eup %438 }
 0x203   : > { %v247_v31 = vmul.f32 0.6931472, %v439_v29 }
 0x205   : > { %v248_v33 = vadd.f32 %v247_v31, %v244_v30 }
 0x207   : > { %v250_v34 = vsub.f32 %v248_v33, %v249_v32 }
 0x209   : > { %251 = vst.msk [vmem:[%s686_s24] sm:$0xff] %vm231_vm1, %v250_v34 }
 0x20a PF: > { %s15_s16 = sadd.s32 1, %s536_s16   ;;  %s728_s9 = smov %s512_s10 }
 0x20b   : > { %p12_p12 = scmp.ge.s32.totalorder %s15_s16, 8   ;;  %s729_s10 = smov %s516_s11 }
 0x20c   : > { %s730_s11 = smov %s624_s29  ;;  %s731_s12 = smov %s528_s14 }
 0x20d   : > { %s732_s13 = smov %s532_s15  ;;  %s733_s14 = smov %s736_s18 }
 0x20e   : > { %s734_s15 = smov %s740_s19  ;;  %14 = sbr.rel (!%p12_p12) target bundleno = 5 (0x5), region = 79 }
 0x215   :  { %271 = vsyncpa [#allocation6], 1 }
 0x216   :  { %273 = vsyncpa [#allocation6 + $0x1], 1 }

</bundles_post_ra>
